<compile_context>
chip_gen: v7x
topology: tpu7x:2x2x1
jax: 0.10.0
libtpu: 0.0.40
codegen_flags: <defaults>
</compile_context>

<pallas_src>
import functools

import jax
import jax.numpy as jnp
from jax import lax
from jax.experimental import pallas as pl
from jax.experimental.pallas import tpu as pltpu

_LANE = 128
_SUB = 8
_MAX_BLOCK_ROWS = 8192                 # (8192, 128) f32 block = 4 MiB per input per buffer
_VMEM_LIMIT_BYTES = 48 * 1024 * 1024   # 2 inputs x 2 buffers x 4 MiB + small outputs << 48 MiB
_LOG_CLAMP = -100.0                    # F.binary_cross_entropy clamps log at -100


def _cdiv(a, b):
    return -(-a // b)


def _num_parallel_slots():
    """1 on single-TensorCore chips (v5e/v6e); 2 only if the device reports 2 TCs (v7x)."""
    try:
        n = int(getattr(jax.devices()[0], "num_cores", 1) or 1)
    except Exception:
        n = 1
    return max(1, min(2, n))


def _elementwise_ce(p, l, binary_labels):
    """Per-element BCE term with PyTorch's -100 log clamp (f32 in / f32 out)."""
    if binary_labels:
        # Exact for l in {0,1}: a single log per element (EUP relief, mainly for v7x).
        q = l * p + (1.0 - l) * (1.0 - p)
        return -jnp.maximum(jnp.log(q), _LOG_CLAMP)
    log_p = jnp.maximum(jnp.log(p), _LOG_CLAMP)
    log_1mp = jnp.maximum(jnp.log(1.0 - p), _LOG_CLAMP)
    return -(l * (log_p - log_1mp) + log_1mp)


def _sums_jnp(p, l, binary_labels):
    """S, T, U partial sums for a tiny (tail) chunk, in plain jnp."""
    p = p.astype(jnp.float32)
    l = l.astype(jnp.float32)
    ce = _elementwise_ce(p, l, binary_labels)
    return jnp.sum(l), jnp.sum(ce), jnp.sum(l * ce)


def _make_kernel(block_rows, blocks_per_slot, total_blocks, rows,
                 binary_labels, need_guard, need_row_mask):
    """Streaming S/T/U accumulation kernel; all sizing baked in statically."""
    last_valid_rows = rows - (total_blocks - 1) * block_rows  # static int

    def kernel(p_ref, l_ref, o_ref):
        # Zero this slot's resident accumulator block on its first reduction step.
        @pl.when(pl.program_id(1) == 0)
        def _():
            o_ref[...] = jnp.zeros_like(o_ref)

        gblk = pl.program_id(0) * blocks_per_slot + pl.program_id(1)

        def fold(x):
            # (block_rows, 128) -> (8, 128): sublane-group fold with pure VPU adds.
            # No cross-lane (XLU) work, no (8,128)-tile-crossing reshape.
            return jnp.sum(x.reshape(-1, _SUB, _LANE), axis=0)

        def accumulate(mask_rows):
            p = p_ref[...].astype(jnp.float32)
            l = l_ref[...].astype(jnp.float32)
            ce = _elementwise_ce(p, l, binary_labels)
            if mask_rows:
                # Only the last (partial) block pays for this; row-index compare only,
                # applied AFTER ce so it is just 1 iota + 1 compare + 2 selects.
                rid = lax.broadcasted_iota(jnp.int32, (block_rows, _LANE), 0)
                valid = rid < last_valid_rows
                l = jnp.where(valid, l, 0.0)
                ce = jnp.where(valid, ce, 0.0)
            o_ref[0, 0, :, :] += fold(l)        # S partials
            o_ref[0, 1, :, :] += fold(ce)       # T partials
            o_ref[0, 2, :, :] += fold(l * ce)   # U partials

        def dispatch():
            if need_row_mask:
                is_last = gblk == total_blocks - 1
                pl.when(is_last)(lambda: accumulate(True))
                pl.when(jnp.logical_not(is_last))(lambda: accumulate(False))
            else:
                accumulate(False)

        if need_guard:
            # Skip the (at most one) duplicated block from rounding blocks/slot up.
            pl.when(gblk < total_blocks)(dispatch)
        else:
            dispatch()

    return kernel


@functools.partial(jax.jit, static_argnames=("binary_labels", "max_block_rows"))
def cross_entropy_loss(predict, label, binary_labels=False,
                       max_block_rows=_MAX_BLOCK_ROWS):
    """Weighted BCE loss (sum reduction), matching the PyTorch module."""
    orig_n = predict.size
    flat_p = predict.reshape(-1)
    flat_l = label.reshape(-1)

    tile = _SUB * _LANE                   # 1024 elements
    main_n = (orig_n // tile) * tile      # the kernel streams this aligned prefix
    rows = main_n // _LANE                # multiple of 8 by construction

    s = jnp.float32(0.0)
    t = jnp.float32(0.0)
    u = jnp.float32(0.0)

    if rows > 0:
        p2 = (flat_p if main_n == orig_n else flat_p[:main_n]).reshape(rows, _LANE)
        l2 = (flat_l if main_n == orig_n else flat_l[:main_n]).reshape(rows, _LANE)

        max_block_rows = max(_SUB, (int(max_block_rows) // _SUB) * _SUB)
        block_rows = rows if rows <= max_block_rows else max_block_rows
        total_blocks = _cdiv(rows, block_rows)

        num_slots = _num_parallel_slots() if total_blocks >= 2 else 1
        blocks_per_slot = _cdiv(total_blocks, num_slots)
        need_guard = num_slots * blocks_per_slot != total_blocks
        need_row_mask = total_blocks * block_rows != rows

        def in_idx(slot, i):
            blk = slot * blocks_per_slot + i
            if need_guard:
                blk = jnp.minimum(blk, total_blocks - 1)  # keep DMA in-bounds; kernel skips dupes
            return (blk, 0)

        def out_idx(slot, i):
            return (slot, 0, 0, 0)

        kernel = _make_kernel(block_rows, blocks_per_slot, total_blocks, rows,
                              binary_labels, need_guard, need_row_mask)

        partials = pl.pallas_call(
            kernel,
            out_shape=jax.ShapeDtypeStruct((num_slots, 3, _SUB, _LANE), jnp.float32),
            grid_spec=pltpu.PrefetchScalarGridSpec(
                num_scalar_prefetch=0,
                grid=(num_slots, blocks_per_slot),
                in_specs=[
                    pl.BlockSpec((block_rows, _LANE), in_idx),
                    pl.BlockSpec((block_rows, _LANE), in_idx),
                ],
                out_specs=pl.BlockSpec((1, 3, _SUB, _LANE), out_idx),
            ),
            compiler_params=pltpu.CompilerParams(
                dimension_semantics=("parallel", "arbitrary"),
                vmem_limit_bytes=_VMEM_LIMIT_BYTES,
            ),
        )(p2, l2)

        sums = jnp.sum(partials, axis=(0, 2, 3))  # tiny: (num_slots,3,8,128) -> (3,)
        s = s + sums[0]
        t = t + sums[1]
        u = u + sums[2]

    if main_n != orig_n:
        # Ragged (<1024-element) tail: trivial jnp ops on a tiny static slice; avoids any
        # full-array pad/copy on the bandwidth-bound streaming path.
        ts, tt, tu = _sums_jnp(flat_p[main_n:], flat_l[main_n:], binary_labels)
        s = s + ts
        t = t + tt
        u = u + tu

    beta = 1.0 - s / jnp.float32(orig_n)
    loss = (1.0 - beta) * t + (2.0 * beta - 1.0) * u
    return loss


def _reference(predict, label):
    """Plain-JAX reference reproducing the PyTorch forward, for verification."""
    p = predict.astype(jnp.float32)
    l = label.astype(jnp.float32)
    beta = 1.0 - jnp.mean(l)
    weight = 1.0 - beta + (2.0 * beta - 1.0) * l
    log_p = jnp.maximum(jnp.log(p), _LOG_CLAMP)
    log_1mp = jnp.maximum(jnp.log(1.0 - p), _LOG_CLAMP)
    return jnp.sum(-weight * (l * log_p + (1.0 - l) * log_1mp))


if __name__ == "__main__":
    key = jax.random.PRNGKey(0)
    k1, k2, k3, k4, k5, k6 = jax.random.split(key, 6)

    # Case 1: NCHW inputs, 2048 elements (aligned fast path), binary labels, exact two-log path.
    predict1 = jax.random.uniform(k1, (2, 4, 16, 16), jnp.float32, 1e-4, 1.0 - 1e-4)
    label1 = jax.random.bernoulli(k2, 0.3, (2, 4, 16, 16)).astype(jnp.float32)
    loss1 = jax.block_until_ready(cross_entropy_loss(predict1, label1))
    ref1 = _reference(predict1, label1)
    assert jnp.allclose(loss1, ref1, rtol=1e-5, atol=1e-3), (loss1, ref1)

    # Case 2: ragged size (1200 = 1024-element kernel prefix + 176-element jnp tail), soft labels.
    predict2 = jax.random.uniform(k3, (1, 3, 20, 20), jnp.float32, 1e-4, 1.0 - 1e-4)
    label2 = jax.random.uniform(k4, (1, 3, 20, 20), jnp.float32, 0.0, 1.0)
    loss2 = jax.block_until_ready(cross_entropy_loss(predict2, label2))
    ref2 = _reference(predict2, label2)
    assert jnp.allclose(loss2, ref2, rtol=1e-5, atol=1e-3), (loss2, ref2)

    # Case 3: multi-block grid + partial-last-block row mask + single-log binary fast path
    # (small max_block_rows just to exercise the multi-block code paths at small N).
    predict3 = jax.random.uniform(k5, (2, 4, 24, 16), jnp.float32, 1e-4, 1.0 - 1e-4)
    label3 = jax.random.bernoulli(k6, 0.4, (2, 4, 24, 16)).astype(jnp.float32)
    loss3 = jax.block_until_ready(
        cross_entropy_loss(predict3, label3, binary_labels=True, max_block_rows=16))
    ref3 = _reference(predict3, label3)
    assert jnp.allclose(loss3, ref3, rtol=1e-5, atol=1e-3), (loss3, ref3)

    print("KERNEL_OK")
</pallas_src>

<mosaic_0001>
module attributes {stable_mosaic.version = 11 : i64} {
  func.func @kernel(%arg0: i32, %arg1: i32, %arg2: memref<16x128xf32, #tpu.memory_space<vmem>>, %arg3: memref<16x128xf32, #tpu.memory_space<vmem>>, %arg4: memref<1x3x8x128xf32, #tpu.memory_space<vmem>>) attributes {dimension_semantics = [#tpu.dimension_semantics<parallel>, #tpu.dimension_semantics<arbitrary>], iteration_bounds = array<i64: 1, 1>, scalar_prefetch = 0 : i64, scratch_operands = 0 : i64, tpu.core_type = #tpu.core_type<tc>, window_params = [{transform_indices = @transform_0, window_bounds = array<i64: 16, 128>}, {transform_indices = @transform_1, window_bounds = array<i64: 16, 128>}, {transform_indices = @transform_2, window_bounds = array<i64: 1, 3, 8, 128>}]} {
    %c0_i32 = arith.constant 0 : i32
    %0 = arith.cmpi eq, %arg1, %c0_i32 : i32
    %1 = arith.extui %0 : i1 to i32
    %c0_i32_0 = arith.constant 0 : i32
    %2 = arith.cmpi ne, %1, %c0_i32_0 : i32
    scf.if %2 {
      %cst_32 = arith.constant 0.000000e+00 : f32
      %43 = vector.broadcast %cst_32 : f32 to vector<1x3x8x128xf32>
      %c0_33 = arith.constant 0 : index
      %c0_34 = arith.constant 0 : index
      %c0_35 = arith.constant 0 : index
      %c0_36 = arith.constant 0 : index
      %44 = vector.load %arg4[%c0_33, %c0_34, %c0_35, %c0_36] : memref<1x3x8x128xf32, #tpu.memory_space<vmem>>, vector<1x3x8x128xf32>
      tpu.vector_store %arg4[%c0_33, %c0_34, %c0_35, %c0_36], %43 {strides = array<i32>} : memref<1x3x8x128xf32, #tpu.memory_space<vmem>>, vector<1x3x8x128xf32>,
    } else {
    }
    %c0 = arith.constant 0 : index
    %c0_1 = arith.constant 0 : index
    %3 = vector.load %arg2[%c0, %c0_1] : memref<16x128xf32, #tpu.memory_space<vmem>>, vector<16x128xf32>
    %c0_2 = arith.constant 0 : index
    %c0_3 = arith.constant 0 : index
    %4 = vector.load %arg3[%c0_2, %c0_3] : memref<16x128xf32, #tpu.memory_space<vmem>>, vector<16x128xf32>
    %5 = math.log %3 : vector<16x128xf32>
    %cst = arith.constant -1.000000e+02 : f32
    %6 = vector.broadcast %cst : f32 to vector<16x128xf32>
    %7 = arith.maximumf %5, %6 : vector<16x128xf32>
    %cst_4 = arith.constant 1.000000e+00 : f32
    %8 = vector.broadcast %cst_4 : f32 to vector<16x128xf32>
    %9 = arith.subf %8, %3 : vector<16x128xf32>
    %10 = math.log %9 : vector<16x128xf32>
    %cst_5 = arith.constant -1.000000e+02 : f32
    %11 = vector.broadcast %cst_5 : f32 to vector<16x128xf32>
    %12 = arith.maximumf %10, %11 : vector<16x128xf32>
    %13 = arith.subf %7, %12 : vector<16x128xf32>
    %14 = arith.mulf %4, %13 : vector<16x128xf32>
    %15 = arith.addf %14, %12 : vector<16x128xf32>
    %cst_6 = arith.constant 0.000000e+00 : f32
    %16 = vector.broadcast %cst_6 : f32 to vector<16x128xf32>
    %17 = arith.subf %16, %15 : vector<16x128xf32>
    %c0_7 = arith.constant 0 : index
    %c0_8 = arith.constant 0 : index
    %c0_9 = arith.constant 0 : index
    %c0_10 = arith.constant 0 : index
    %18 = vector.load %arg4[%c0_7, %c0_8, %c0_9, %c0_10] : memref<1x3x8x128xf32, #tpu.memory_space<vmem>>, vector<1x1x8x128xf32>
    %19 = vector.shape_cast %18 : vector<1x1x8x128xf32> to vector<8x128xf32>
    %20 = vector.shape_cast %4 : vector<16x128xf32> to vector<2x8x128xf32>
    %cst_11 = arith.constant dense<0.000000e+00> : vector<8x128xf32>
    %21 = vector.multi_reduction <add>, %20, %cst_11 [0] : vector<2x8x128xf32> to vector<8x128xf32>
    %22 = arith.addf %19, %21 : vector<8x128xf32>
    %c0_12 = arith.constant 0 : index
    %c0_13 = arith.constant 0 : index
    %c0_14 = arith.constant 0 : index
    %c0_15 = arith.constant 0 : index
    %23 = vector.load %arg4[%c0_12, %c0_13, %c0_14, %c0_15] : memref<1x3x8x128xf32, #tpu.memory_space<vmem>>, vector<1x1x8x128xf32>
    %24 = vector.shape_cast %23 : vector<1x1x8x128xf32> to vector<8x128xf32>
    %25 = vector.shape_cast %22 : vector<8x128xf32> to vector<1x1x8x128xf32>
    tpu.vector_store %arg4[%c0_12, %c0_13, %c0_14, %c0_15], %25 {strides = array<i32>} : memref<1x3x8x128xf32, #tpu.memory_space<vmem>>, vector<1x1x8x128xf32>,
    %c0_16 = arith.constant 0 : index
    %c1 = arith.constant 1 : index
    %c0_17 = arith.constant 0 : index
    %c0_18 = arith.constant 0 : index
    %26 = vector.load %arg4[%c0_16, %c1, %c0_17, %c0_18] : memref<1x3x8x128xf32, #tpu.memory_space<vmem>>, vector<1x1x8x128xf32>
    %27 = vector.shape_cast %26 : vector<1x1x8x128xf32> to vector<8x128xf32>
    %28 = vector.shape_cast %17 : vector<16x128xf32> to vector<2x8x128xf32>
    %cst_19 = arith.constant dense<0.000000e+00> : vector<8x128xf32>
    %29 = vector.multi_reduction <add>, %28, %cst_19 [0] : vector<2x8x128xf32> to vector<8x128xf32>
    %30 = arith.addf %27, %29 : vector<8x128xf32>
    %c0_20 = arith.constant 0 : index
    %c1_21 = arith.constant 1 : index
    %c0_22 = arith.constant 0 : index
    %c0_23 = arith.constant 0 : index
    %31 = vector.load %arg4[%c0_20, %c1_21, %c0_22, %c0_23] : memref<1x3x8x128xf32, #tpu.memory_space<vmem>>, vector<1x1x8x128xf32>
    %32 = vector.shape_cast %31 : vector<1x1x8x128xf32> to vector<8x128xf32>
    %33 = vector.shape_cast %30 : vector<8x128xf32> to vector<1x1x8x128xf32>
    tpu.vector_store %arg4[%c0_20, %c1_21, %c0_22, %c0_23], %33 {strides = array<i32>} : memref<1x3x8x128xf32, #tpu.memory_space<vmem>>, vector<1x1x8x128xf32>,
    %c0_24 = arith.constant 0 : index
    %c2 = arith.constant 2 : index
    %c0_25 = arith.constant 0 : index
    %c0_26 = arith.constant 0 : index
    %34 = vector.load %arg4[%c0_24, %c2, %c0_25, %c0_26] : memref<1x3x8x128xf32, #tpu.memory_space<vmem>>, vector<1x1x8x128xf32>
    %35 = vector.shape_cast %34 : vector<1x1x8x128xf32> to vector<8x128xf32>
    %36 = arith.mulf %4, %17 : vector<16x128xf32>
    %37 = vector.shape_cast %36 : vector<16x128xf32> to vector<2x8x128xf32>
    %cst_27 = arith.constant dense<0.000000e+00> : vector<8x128xf32>
    %38 = vector.multi_reduction <add>, %37, %cst_27 [0] : vector<2x8x128xf32> to vector<8x128xf32>
    %39 = arith.addf %35, %38 : vector<8x128xf32>
    %c0_28 = arith.constant 0 : index
    %c2_29 = arith.constant 2 : index
    %c0_30 = arith.constant 0 : index
    %c0_31 = arith.constant 0 : index
    %40 = vector.load %arg4[%c0_28, %c2_29, %c0_30, %c0_31] : memref<1x3x8x128xf32, #tpu.memory_space<vmem>>, vector<1x1x8x128xf32>
    %41 = vector.shape_cast %40 : vector<1x1x8x128xf32> to vector<8x128xf32>
    %42 = vector.shape_cast %39 : vector<8x128xf32> to vector<1x1x8x128xf32>
    tpu.vector_store %arg4[%c0_28, %c2_29, %c0_30, %c0_31], %42 {strides = array<i32>} : memref<1x3x8x128xf32, #tpu.memory_space<vmem>>, vector<1x1x8x128xf32>,
    return
  }
  func.func @transform_0(%arg0: i32, %arg1: i32) -> (i32, i32) {
    %c1_i32 = arith.constant 1 : i32
    %0 = arith.muli %arg0, %c1_i32 : i32
    %1 = arith.addi %0, %arg1 : i32
    %c0_i32 = arith.constant 0 : i32
    %c0_i32_0 = arith.constant 0 : i32
    return %1, %c0_i32 : i32, i32
  }
  func.func @transform_1(%arg0: i32, %arg1: i32) -> (i32, i32) {
    %c1_i32 = arith.constant 1 : i32
    %0 = arith.muli %arg0, %c1_i32 : i32
    %1 = arith.addi %0, %arg1 : i32
    %c0_i32 = arith.constant 0 : i32
    %c0_i32_0 = arith.constant 0 : i32
    return %1, %c0_i32 : i32, i32
  }
  func.func @transform_2(%arg0: i32, %arg1: i32) -> (i32, i32, i32, i32) {
    %c0_i32 = arith.constant 0 : i32
    %c0_i32_0 = arith.constant 0 : i32
    %c0_i32_1 = arith.constant 0 : i32
    %c0_i32_2 = arith.constant 0 : i32
    return %arg0, %c0_i32, %c0_i32_0, %c0_i32_1 : i32, i32, i32, i32
  }
}

</mosaic_0001>

<bundles_post_ra>
// kernel: cross_entropy_loss.1
= control target key start
LH: loop header
LB: loop body
LE: loop exit
PB: predicated region body
PF: predicated region fallthrough
CT: control target
= control target key end

     0   :  { %s169_s1 = inlined_call_operand.vmem [shape: f32[16,128], index: 1, kind: input, shape index: {}]   ;;  %s170_s0 = inlined_call_operand.vmem [shape: f32[16,128], index: 0, kind: input, shape index: {}]   ;;  %s171_s2 = inlined_call_operand.vmem [shape: f32[1,3,8,128], index: 2, kind: output, shape index: {}]  }
   0x1   :  { %v64_v0 = vld [vmem:[%s169_s1] sm:$0xff]  ;;  %v65_v1 = vld [vmem:[%s169_s1 + $0x8] sm:$0xff] }
   0x2   :  { %v62_v2 = vld [vmem:[%s170_s0] sm:$0xff]  ;;  %v89_v3 = vadd.f32 %v65_v1, %v64_v0  ;;  %v63_v4 = vld [vmem:[%s170_s0 + $0x8] sm:$0xff] }
   0x3   :  { %125 = vlog2.f32 %v62_v2  ;;  %v72_v5 = vsub.f32 1.0, %v62_v2  ;;  %v73_v6 = vsub.f32 1.0, %v63_v4 }
   0x4   :  { %127 = vlog2.f32 %v63_v4  ;;  %91 = vst [vmem:[%s171_s2] sm:$0xff] %v89_v3 }
   0x5   :  { %129 = vlog2.f32 %v72_v5 }
   0x6   :  { %131 = vlog2.f32 %v73_v6 }
   0xd   :  { %v126_v7 = vpop.eup %125 }
   0xe   :  { %v128_v8 = vpop.eup %127  ;;  %v67_v9 = vmul.f32 0.6931472, %v126_v7 }
   0xf   :  { %v130_v10 = vpop.eup %129  ;;  %v69_v11 = vmul.f32 0.6931472, %v128_v8 }
  0x10   :  { %v132_v12 = vpop.eup %131  ;;  %v70_v13 = vmax.f32 %v67_v9, -100.0  ;;  %v75_v14 = vmul.f32 0.6931472, %v130_v10 }
  0x11   :  { %v71_v15 = vmax.f32 %v69_v11, -100.0  ;;  %v77_v16 = vmul.f32 0.6931472, %v132_v12 }
  0x12   :  { %v78_v17 = vmax.f32 %v75_v14, -100.0 }
  0x13   :  { %v79_v18 = vmax.f32 %v77_v16, -100.0 }
  0x14   :  { %v80_v19 = vsub.f32 %v70_v13, %v78_v17 }
  0x15   :  { %v81_v20 = vsub.f32 %v71_v15, %v79_v18 }
  0x16   :  { %v82_v21 = vmul.f32 %v80_v19, %v64_v0 }
  0x17   :  { %v83_v22 = vmul.f32 %v81_v20, %v65_v1 }
  0x18   :  { %v84_v23 = vadd.f32 %v82_v21, %v78_v17 }
  0x19   :  { %v85_v24 = vadd.f32 %v83_v22, %v79_v18 }
  0x1a   :  { %v86_v25 = vsub.f32 0.0, %v84_v23 }
  0x1b   :  { %v87_v26 = vsub.f32 0.0, %v85_v24 }
  0x1c   :  { %v99_v27 = vmul.f32 %v86_v25, %v64_v0 }
  0x1d   :  { %v94_v28 = vadd.f32 %v87_v26, %v86_v25  ;;  %v100_v29 = vmul.f32 %v87_v26, %v65_v1 }
  0x1f   :  { %v101_v30 = vadd.f32 %v100_v29, %v99_v27  ;;  %121 = vst [vmem:[%s171_s2 + $0x8] sm:$0xff] %v94_v28 }
  0x21   :  { %123 = vst [vmem:[%s171_s2 + $0x10] sm:$0xff] %v101_v30 }

</bundles_post_ra>
